<compile_context>
chip_gen: v6e
topology: v6e:2x2x1
jax: 0.10.0
libtpu: 0.0.40
codegen_flags: <defaults>
</compile_context>

<pallas_src>
import functools

import jax
import jax.numpy as jnp
from jax.experimental import pallas as pl
from jax.experimental.pallas import tpu as pltpu


def _head_kernel(x_ref, wq_ref, wk_ref, wv_ref, bias_ref, o_ref, *, scale: float):
    # x_ref: (Bb, T, C); wq/wk/wv: (C, H); bias: (T, T); o_ref: (Bb, T, H)
    Bb, T, C = x_ref.shape
    H = wq_ref.shape[1]

    # Flatten to one big 2-D LHS and cast MXU inputs to bf16 (accumulation
    # stays f32 via preferred_element_type).
    x2d = x_ref[...].reshape(Bb * T, C).astype(jnp.bfloat16)      # (M, C)
    wq = wq_ref[...].astype(jnp.bfloat16)
    wk = wk_ref[...].astype(jnp.bfloat16)
    wv = wv_ref[...].astype(jnp.bfloat16)

    def proj(w):
        return jax.lax.dot_general(
            x2d, w,
            dimension_numbers=(((1,), (0,)), ((), ())),
            preferred_element_type=jnp.float32)                   # (M, H) f32

    # Three separate projections reusing the already-loaded x: avoids the
    # non-128-offset lane slices a fused (C, 3H) weight would require.
    # 1/sqrt(head_size) is folded into q (mask is scale-invariant, identical
    # math to the reference).
    q = (proj(wq) * scale).astype(jnp.bfloat16).reshape(Bb, T, H)
    k = proj(wk).astype(jnp.bfloat16).reshape(Bb, T, H)
    v = proj(wv).astype(jnp.bfloat16).reshape(Bb, T, H)

    # Attention scores: contract the H axes directly (no k.T materialization).
    scores = jax.lax.dot_general(
        q, k,
        dimension_numbers=(((2,), (2,)), ((0,), (0,))),
        preferred_element_type=jnp.float32)                       # (Bb, T, T)

    # Causal masking via the resident additive bias (0 on/below diag, -inf
    # above); every row keeps its finite diagonal so max/exp cannot NaN.
    scores = scores + bias_ref[...]

    m = jnp.max(scores, axis=-1, keepdims=True)                   # (Bb, T, 1)
    e = jnp.exp(scores - m)                                       # exp(-inf)=0
    denom = jnp.sum(e, axis=-1, keepdims=True)                    # >= 1

    inv = pl.reciprocal(denom, approx=True)                       # EUP slot
    inv = inv * (2.0 - denom * inv)                               # Newton -> ~f32

    # TODO(synk): nn.Dropout(p=0.1) on the attention weights is identity in
    # eval/inference mode; training-mode dropout would need pltpu.prng_seed +
    # pltpu.prng_random_bits masking here.

    out = jax.lax.dot_general(
        e.astype(jnp.bfloat16), v,
        dimension_numbers=(((2,), (1,)), ((0,), (0,))),
        preferred_element_type=jnp.float32)                       # (Bb, T, H)
    out = out * inv                                               # fold denom here

    o_ref[...] = out.astype(o_ref.dtype)


# Conservative per-step budget: stays under the v5e 16 MiB scoped-VMEM default
# (and well under v6e/v7x defaults), so no vmem_limit_bytes override is needed.
_VMEM_BLOCK_BUDGET = 12 * 1024 * 1024


def _pick_block_b(B: int, T: int, C: int, H: int) -> int:
    # Bytes per batch row: double-buffered x/out blocks + in-kernel
    # intermediates (q/k/v f32 + bf16 copies, f32 out acc, scores/e tiles).
    per_row = T * (2 * C * 4 + 2 * H * 4        # pipelined x / out blocks
                   + 3 * H * (4 + 2)            # q, k, v (f32 + bf16)
                   + H * 4)                     # f32 output accumulator
    per_row += T * T * (4 + 4 + 2)              # scores f32, e f32 + bf16
    block_b = max(1, _VMEM_BLOCK_BUDGET // max(per_row, 1))
    block_b = min(block_b, B)
    # Keep >= 2 grid steps so the "parallel" batch axis can shard across both
    # TensorCores on v7x megacore (one step would leave a TC idle).
    if B >= 2:
        block_b = min(block_b, B // 2)
    block_b = max(1, block_b)
    while B % block_b:
        block_b -= 1
    return block_b


def head_forward(x, wk, wq, wv, head_size: int, *, block_b: int | None = None):
    """x: (B, T, C); wk/wq/wv: (C, H) (transposed nn.Linear.weight)."""
    B, T, C = x.shape
    H = wq.shape[1]

    if block_b is None:
        block_b = _pick_block_b(B, T, C, H)
    block_b = max(1, min(block_b, B))
    while B % block_b:
        block_b -= 1

    # Additive causal bias built once on the host; constant index_map keeps it
    # resident in VMEM across grid steps (no per-step iota / compare).
    row = jax.lax.broadcasted_iota(jnp.int32, (T, T), 0)
    col = jax.lax.broadcasted_iota(jnp.int32, (T, T), 1)
    bias = jnp.where(col <= row, 0.0, -jnp.inf).astype(jnp.float32)

    kernel = functools.partial(_head_kernel, scale=float(head_size) ** -0.5)

    return pl.pallas_call(
        kernel,
        out_shape=jax.ShapeDtypeStruct((B, T, H), x.dtype),
        grid_spec=pltpu.PrefetchScalarGridSpec(
            num_scalar_prefetch=0,
            grid=(B // block_b,),
            in_specs=[
                pl.BlockSpec((block_b, T, C), lambda b: (b, 0, 0)),
                pl.BlockSpec((C, H), lambda b: (0, 0)),   # wq (constant)
                pl.BlockSpec((C, H), lambda b: (0, 0)),   # wk (constant)
                pl.BlockSpec((C, H), lambda b: (0, 0)),   # wv (constant)
                pl.BlockSpec((T, T), lambda b: (0, 0)),   # causal bias (constant)
            ],
            out_specs=pl.BlockSpec((block_b, T, H), lambda b: (b, 0, 0)),
        ),
        compiler_params=pltpu.CompilerParams(
            dimension_semantics=("parallel",),
        ),
    )(x, wq, wk, wv, bias)


def reference_forward(x, wk, wq, wv, head_size: int):
    """Pure-JAX f32 reference mirroring the PyTorch module (eval mode)."""
    k = x @ wk
    q = x @ wq
    v = x @ wv
    wei = jnp.einsum("btd,bsd->bts", q, k)
    T = x.shape[1]
    mask = jnp.tril(jnp.ones((T, T), dtype=bool))
    wei = jnp.where(mask, wei, -jnp.inf)
    wei = wei / (head_size ** 0.5)
    wei = jax.nn.softmax(wei, axis=-1)
    return wei @ v


if __name__ == "__main__":
    # Small shapes consistent with the module:
    # B=2, T(block_size)=8, C(n_embd)=32, head_size=16
    B, T, C, H = 2, 8, 32, 16

    key = jax.random.PRNGKey(0)
    kx, kk, kq, kv = jax.random.split(key, 4)

    x = jax.random.normal(kx, (B, T, C), dtype=jnp.float32)
    # nn.Linear(n_embd, head_size).weight has shape (H, C); pass its transpose.
    wk = (jax.random.normal(kk, (H, C), dtype=jnp.float32) * 0.02).T
    wq = (jax.random.normal(kq, (H, C), dtype=jnp.float32) * 0.02).T
    wv = (jax.random.normal(kv, (H, C), dtype=jnp.float32) * 0.02).T

    out = head_forward(x, wk, wq, wv, head_size=H)
    out = jax.block_until_ready(out)

    ref = reference_forward(x, wk, wq, wv, head_size=H)
    assert out.shape == (B, T, H)
    # bf16 MXU inputs (f32 accumulation) vs. pure-f32 reference: allow a
    # correspondingly looser tolerance (observed error ~1e-3 at these scales).
    assert jnp.allclose(out, ref, atol=1e-2, rtol=1e-2), "mismatch vs reference"

    print("KERNEL_OK")
</pallas_src>

<mosaic_0001>
module attributes {stable_mosaic.version = 11 : i64} {
  func.func @_head_kernel(%arg0: i32, %arg1: memref<1x8x32xf32, #tpu.memory_space<vmem>>, %arg2: memref<32x16xf32, #tpu.memory_space<vmem>>, %arg3: memref<32x16xf32, #tpu.memory_space<vmem>>, %arg4: memref<32x16xf32, #tpu.memory_space<vmem>>, %arg5: memref<8x8xf32, #tpu.memory_space<vmem>>, %arg6: memref<1x8x16xf32, #tpu.memory_space<vmem>>) attributes {dimension_semantics = [#tpu.dimension_semantics<parallel>], iteration_bounds = array<i64: 2>, scalar_prefetch = 0 : i64, scratch_operands = 0 : i64, tpu.core_type = #tpu.core_type<tc>, window_params = [{transform_indices = @transform_0, window_bounds = array<i64: 1, 8, 32>}, {pipeline_mode = #tpu.pipeline_mode<synchronous>, transform_indices = @transform_1, window_bounds = array<i64: 32, 16>}, {pipeline_mode = #tpu.pipeline_mode<synchronous>, transform_indices = @transform_2, window_bounds = array<i64: 32, 16>}, {pipeline_mode = #tpu.pipeline_mode<synchronous>, transform_indices = @transform_3, window_bounds = array<i64: 32, 16>}, {pipeline_mode = #tpu.pipeline_mode<synchronous>, transform_indices = @transform_4, window_bounds = array<i64: 8, 8>}, {transform_indices = @transform_5, window_bounds = array<i64: 1, 8, 16>}]} {
    %c0 = arith.constant 0 : index
    %c0_0 = arith.constant 0 : index
    %c0_1 = arith.constant 0 : index
    %0 = vector.load %arg1[%c0, %c0_0, %c0_1] : memref<1x8x32xf32, #tpu.memory_space<vmem>>, vector<1x8x32xf32>
    %1 = vector.shape_cast %0 : vector<1x8x32xf32> to vector<8x32xf32>
    %2 = arith.truncf %1 : vector<8x32xf32> to vector<8x32xbf16>
    %c0_2 = arith.constant 0 : index
    %c0_3 = arith.constant 0 : index
    %3 = vector.load %arg2[%c0_2, %c0_3] : memref<32x16xf32, #tpu.memory_space<vmem>>, vector<32x16xf32>
    %4 = arith.truncf %3 : vector<32x16xf32> to vector<32x16xbf16>
    %c0_4 = arith.constant 0 : index
    %c0_5 = arith.constant 0 : index
    %5 = vector.load %arg3[%c0_4, %c0_5] : memref<32x16xf32, #tpu.memory_space<vmem>>, vector<32x16xf32>
    %6 = arith.truncf %5 : vector<32x16xf32> to vector<32x16xbf16>
    %c0_6 = arith.constant 0 : index
    %c0_7 = arith.constant 0 : index
    %7 = vector.load %arg4[%c0_6, %c0_7] : memref<32x16xf32, #tpu.memory_space<vmem>>, vector<32x16xf32>
    %8 = arith.truncf %7 : vector<32x16xf32> to vector<32x16xbf16>
    %cst = arith.constant dense<0.000000e+00> : vector<8x16xf32>
    %9 = tpu.matmul %2, %4, %cst {dimension_numbers = #tpu.dot_dimension_numbers<[1], [0], [0], [1], [0, 0, 1, 1], [], []>} : vector<8x32xbf16>, vector<32x16xbf16>, vector<8x16xf32> -> vector<8x16xf32>
    %cst_8 = arith.constant 2.500000e-01 : f32
    %10 = vector.broadcast %cst_8 : f32 to vector<8x16xf32>
    %11 = arith.mulf %9, %10 : vector<8x16xf32>
    %12 = arith.truncf %11 : vector<8x16xf32> to vector<8x16xbf16>
    %13 = vector.shape_cast %12 : vector<8x16xbf16> to vector<1x8x16xbf16>
    %cst_9 = arith.constant dense<0.000000e+00> : vector<8x16xf32>
    %14 = tpu.matmul %2, %6, %cst_9 {dimension_numbers = #tpu.dot_dimension_numbers<[1], [0], [0], [1], [0, 0, 1, 1], [], []>} : vector<8x32xbf16>, vector<32x16xbf16>, vector<8x16xf32> -> vector<8x16xf32>
    %15 = arith.truncf %14 : vector<8x16xf32> to vector<8x16xbf16>
    %16 = vector.shape_cast %15 : vector<8x16xbf16> to vector<1x8x16xbf16>
    %cst_10 = arith.constant dense<0.000000e+00> : vector<8x16xf32>
    %17 = tpu.matmul %2, %8, %cst_10 {dimension_numbers = #tpu.dot_dimension_numbers<[1], [0], [0], [1], [0, 0, 1, 1], [], []>} : vector<8x32xbf16>, vector<32x16xbf16>, vector<8x16xf32> -> vector<8x16xf32>
    %18 = arith.truncf %17 : vector<8x16xf32> to vector<8x16xbf16>
    %19 = vector.shape_cast %18 : vector<8x16xbf16> to vector<1x8x16xbf16>
    %cst_11 = arith.constant dense<0.000000e+00> : vector<1x8x8xf32>
    %20 = tpu.matmul %13, %16, %cst_11 {dimension_numbers = #tpu.dot_dimension_numbers<[2], [2], [1], [1], [0, 0, 0, 1, 1, 1], [0], [0]>} : vector<1x8x16xbf16>, vector<1x8x16xbf16>, vector<1x8x8xf32> -> vector<1x8x8xf32>
    %c0_12 = arith.constant 0 : index
    %c0_13 = arith.constant 0 : index
    %21 = vector.load %arg5[%c0_12, %c0_13] : memref<8x8xf32, #tpu.memory_space<vmem>>, vector<8x8xf32>
    %22 = vector.shape_cast %21 : vector<8x8xf32> to vector<1x8x8xf32>
    %23 = arith.addf %20, %22 : vector<1x8x8xf32>
    %cst_14 = arith.constant dense<0xFF800000> : vector<1x8xf32>
    %24 = vector.multi_reduction <maximumf>, %23, %cst_14 [2] : vector<1x8x8xf32> to vector<1x8xf32>
    %25 = vector.shape_cast %24 : vector<1x8xf32> to vector<1x8x1xf32>
    %26 = vector.broadcast %25 : vector<1x8x1xf32> to vector<1x8x8xf32>
    %27 = arith.subf %23, %26 : vector<1x8x8xf32>
    %28 = math.exp %27 : vector<1x8x8xf32>
    %cst_15 = arith.constant dense<0.000000e+00> : vector<1x8xf32>
    %29 = vector.multi_reduction <add>, %28, %cst_15 [2] : vector<1x8x8xf32> to vector<1x8xf32>
    %30 = vector.shape_cast %29 : vector<1x8xf32> to vector<1x8x1xf32>
    %31 = tpu.reciprocal %30 {approx = true} : vector<1x8x1xf32> -> vector<1x8x1xf32>
    %32 = arith.mulf %30, %31 : vector<1x8x1xf32>
    %cst_16 = arith.constant 2.000000e+00 : f32
    %33 = vector.broadcast %cst_16 : f32 to vector<1x8x1xf32>
    %34 = arith.subf %33, %32 : vector<1x8x1xf32>
    %35 = arith.mulf %31, %34 : vector<1x8x1xf32>
    %36 = arith.truncf %28 : vector<1x8x8xf32> to vector<1x8x8xbf16>
    %cst_17 = arith.constant dense<0.000000e+00> : vector<1x8x16xf32>
    %37 = tpu.matmul %36, %19, %cst_17 {dimension_numbers = #tpu.dot_dimension_numbers<[2], [1], [1], [2], [0, 0, 0, 1, 1, 2], [0], [0]>} : vector<1x8x8xbf16>, vector<1x8x16xbf16>, vector<1x8x16xf32> -> vector<1x8x16xf32>
    %38 = vector.broadcast %35 : vector<1x8x1xf32> to vector<1x8x16xf32>
    %39 = arith.mulf %37, %38 : vector<1x8x16xf32>
    %c0_18 = arith.constant 0 : index
    %c0_19 = arith.constant 0 : index
    %c0_20 = arith.constant 0 : index
    %40 = vector.load %arg6[%c0_18, %c0_19, %c0_20] : memref<1x8x16xf32, #tpu.memory_space<vmem>>, vector<1x8x16xf32>
    tpu.vector_store %arg6[%c0_18, %c0_19, %c0_20], %39 {strides = array<i32>} : memref<1x8x16xf32, #tpu.memory_space<vmem>>, vector<1x8x16xf32>,
    return
  }
  func.func @transform_0(%arg0: i32) -> (i32, i32, i32) {
    %c0_i32 = arith.constant 0 : i32
    %c0_i32_0 = arith.constant 0 : i32
    %c0_i32_1 = arith.constant 0 : i32
    return %arg0, %c0_i32, %c0_i32_0 : i32, i32, i32
  }
  func.func @transform_1(%arg0: i32) -> (i32, i32) {
    %c0_i32 = arith.constant 0 : i32
    %c0_i32_0 = arith.constant 0 : i32
    %c0_i32_1 = arith.constant 0 : i32
    return %c0_i32, %c0_i32_0 : i32, i32
  }
  func.func @transform_2(%arg0: i32) -> (i32, i32) {
    %c0_i32 = arith.constant 0 : i32
    %c0_i32_0 = arith.constant 0 : i32
    %c0_i32_1 = arith.constant 0 : i32
    return %c0_i32, %c0_i32_0 : i32, i32
  }
  func.func @transform_3(%arg0: i32) -> (i32, i32) {
    %c0_i32 = arith.constant 0 : i32
    %c0_i32_0 = arith.constant 0 : i32
    %c0_i32_1 = arith.constant 0 : i32
    return %c0_i32, %c0_i32_0 : i32, i32
  }
  func.func @transform_4(%arg0: i32) -> (i32, i32) {
    %c0_i32 = arith.constant 0 : i32
    %c0_i32_0 = arith.constant 0 : i32
    %c0_i32_1 = arith.constant 0 : i32
    return %c0_i32, %c0_i32_0 : i32, i32
  }
  func.func @transform_5(%arg0: i32) -> (i32, i32, i32) {
    %c0_i32 = arith.constant 0 : i32
    %c0_i32_0 = arith.constant 0 : i32
    %c0_i32_1 = arith.constant 0 : i32
    return %arg0, %c0_i32, %c0_i32_0 : i32, i32, i32
  }
}

</mosaic_0001>

<bundles_post_ra>
// kernel: tpu_custom_call.1
= control target key start
LH: loop header
LB: loop body
LE: loop exit
PB: predicated region body
PF: predicated region fallthrough
CT: control target
= control target key end

     0   :  { %10 = vsyncpa [#allocation3], 0  ;;  %s912_s0 = inlined_call_operand.vmem [shape: f32[2,8,32], index: 0, kind: input, shape index: {}]   ;;  %s913_s1 = inlined_call_operand.vmem [shape: f32[32,16], index: 1, kind: input, shape index: {}]   ;;  %s914_s2 = inlined_call_operand.vmem [shape: f32[32,16], index: 2, kind: input, shape index: {}]   ;;  %s915_s3 = inlined_call_operand.vmem [shape: f32[32,16], index: 3, kind: input, shape index: {}]   ;;  %s916_s4 = inlined_call_operand.vmem [shape: f32[8,8], index: 4, kind: input, shape index: {}]   ;;  %s917_s5 = inlined_call_operand.hbm [shape: f32[2,8,16], index: 5, kind: output, shape index: {}]  }
   0x1   :  { %12 = vsyncpa [#allocation3 + $0x1], 0  ;;  %s758_s18 = smov 0   ;;  %s760_s19 = smov 0  }
   0x2   :  { %s762_s20 = smov 0   ;;  %s764_s21 = smov 0  }
   0x3 LB: > { %s779_s22 = sadd.s32 4294967295, %s723_s21   ;;  %s554_s23 = sadd.s32 4294967294, %s723_s21   ;;  %s723_s21 = sphi %s764_s21, %s923_s21   ;;  %s719_s20 = sphi %s762_s20, %s922_s20   ;;  %s715_s19 = sphi %s760_s19, %s921_s19   ;;  %s711_s18 = sphi %s758_s18, %s920_s18  }
   0x4   : > { %s783_s24 = sadd.s32 1, %s723_s21   ;;  %s135_s25 = sadd.s32 1, %s719_s20 }
   0x5   : > { %s132_s26 = ssub.s32 %s723_s21, %s783_s24  ;;  %p145_p0 = scmp.ne.s32.totalorder %s719_s20, %s715_s19 }
   0x6   : > { %p133_p1 = scmp.eq.s32.totalorder %s132_s26, 0  ;;  %p146_p2 = scmp.eq.s32.totalorder %s779_s22, 1 }
   0x7   : > { %p151_p3 = scmp.ne.s32.totalorder %s715_s19, %s711_s18  ;;  %p152_p4 = scmp.eq.s32.totalorder %s554_s23, 1 }
   0x8   : > { %s794_s27 = scalar_select %p133_p1, %s719_s20, %s135_s25  }
   0x9   : > { %p796_p5 = por %p146_p2, %p145_p0  ;;  %p800_p6 = por %p152_p4, %p151_p3 }
   0xa   : > { %p557_p7 = scmp.ge.s32.totalorder %s723_s21, 1  ;;  %p189_p8 = scmp.lt.s32.totalorder %s723_s21, 3 }
   0xc   : > { %p190_p9 = pnand %p557_p7, %p189_p8 }
   0xd   : > { %p216_p10 = scmp.lt.s32.totalorder (!%p190_p9), %s779_s22, 1  ;;  %s213_s26 = sand.u32 (!%p190_p9), 1, %s715_s19  }
   0xe   : > { %193 = sbr.rel (%p190_p9) target bundleno = 795 (0x31b), region = 40  ;;  %s727_s13 = smov (!%p190_p9), [#allocation2]  }
   0xf   : > { %s667_s14 = sshll.u32 (!%p190_p9), %s727_s13, 4  ;;  %s668_s14 = int_to_ptr.vmem [resolvable:$false] %s667_s14 }
  0x10   : > { %s669_s15 = scalar_lea.vmem (!%p190_p9), %s668_s14, 256 }
  0x13   : > { %v231_v0 = vld [vmem:[%s914_s2 + $0x10] sm:$0xff]  ;;  %v232_v1 = vld [vmem:[%s914_s2 + $0x18] sm:$0xff]  ;;  %v725_v3 = vmov 0.0   ;;  %v229_v6 = vld [vmem:[%s914_s2] sm:$0xff]  ;;  %vm726_vm0 = vmmov 0   ;;  %s217_s30 = scalar_select %p216_p10, %s779_s22, 1 }
  0x14   : > { %v225_v2 = vld [vmem:[%s913_s1 + $0x10] sm:$0xff]  ;;  %590 = vmatprep.subr.bf16.mxu1 %v725_v3  ;;  %582 = vmatprep.subr.bf16.mxu0 %v725_v3  ;;  %v234_v4 = vpack.c.bf16 %v232_v1, %v231_v0  ;;  %v226_v5 = vld [vmem:[%s913_s1 + $0x18] sm:$0xff]  ;;  %v230_v7 = vld [vmem:[%s914_s2 + $0x8] sm:$0xff]  ;;  %vm241_vm1 = vcmask 261120   ;;  %vm370_vm2 = vcmask 130048   ;;  %vm417_vm3 = vcmask 64512  }
  0x15   : > { %v228_v8 = vpack.c.bf16 %v226_v5, %v225_v2  ;;  %v223_v9 = vld [vmem:[%s913_s1] sm:$0xff]  ;;  %v224_v10 = vld [vmem:[%s913_s1 + $0x8] sm:$0xff]  ;;  %594 = vmatprep.mubr.msk.bf16.mxu1 %vm726_vm0, %v725_v3  ;;  %586 = vmatprep.mubr.msk.bf16.mxu0 %vm726_vm0, %v725_v3  ;;  %v233_v11 = vpack.c.bf16 %v230_v7, %v229_v6  ;;  %s559_s6 = sshll.u32 %s217_s30, 3  ;;  %v237_v15 = vld [vmem:[%s915_s3 + $0x10] sm:$0xff]  ;;  %vm435_vm4 = vcmask 1043456   ;;  %s558_s30 = sshll.u32 %s213_s26, 3 }
  0x16   : > { %591 = vmatpush3.bf16.msra.mxu1 %v234_v4  ;;  %v227_v12 = vpack.c.bf16 %v224_v10, %v223_v9  ;;  %s219_s9 = scalar_lea.vmem %s912_s0, %s559_s6  ;;  %v238_v16 = vld [vmem:[%s915_s3 + $0x18] sm:$0xff]  ;;  %v235_v17 = vld [vmem:[%s915_s3] sm:$0xff]  ;;  %v236_v19 = vld [vmem:[%s915_s3 + $0x8] sm:$0xff]  ;;  %s566_s6 = sshll.u32 %s779_s22, 7 }
  0x17   : > { %583 = vmatpush3.bf16.msra.mxu0 %v228_v8  ;;  %592 = vmatprep.subr.bf16.mxu1 %v725_v3  ;;  %v221_v13 = vld [vmem:[%s219_s9] sm:$0xff]  ;;  %v240_v18 = vpack.c.bf16 %v238_v16, %v237_v15  ;;  %v239_v20 = vpack.c.bf16 %v236_v19, %v235_v17  ;;  %s215_s7 = scalar_lea.vmem [#allocation2], %s558_s30  ;;  %s870_s11 = scalar_lea.hbm %s917_s5, %s566_s6 }
  0x18   : > { %584 = vmatprep.subr.bf16.mxu0 %v725_v3  ;;  %v222_v14 = vpack.c.bf16 %v221_v13, %v221_v13  ;;  %v369_v33 = vld [vmem:[%s916_s4] sm:$0xff]  ;;  %s495_s8 = sshll.u32 %s215_s7, 4  ;;  %s482_s22 = scalar_lea.sflag [#allocation3], %s213_s26  ;;  %s872_s8 = int_to_ptr.vmem [resolvable:$true] %s495_s8 }
  0x19   : > { %s663_s12 = scalar_lea.vmem %s872_s8, 128  ;;  %p670_p0 = scmp.lt.s32.totalorder %s872_s8, %s668_s14 }
  0x1a   : > { %593 = vmatpush3.bf16.msra.mxu1 %v233_v11  ;;  %p664_p11 = scmp.ne.s32.totalorder %s872_s8, %s663_s12  ;;  %p671_p1 = scmp.lt.s32.totalorder %s669_s15, %s663_s12 }
  0x1b   : > { %585 = vmatpush3.bf16.msra.mxu0 %v227_v12  ;;  %606 = vmatprep.subr.bf16.mxu1 %v725_v3 }
  0x1c   : > { %598 = vmatprep.subr.bf16.mxu0 %v725_v3  ;;  %p665_p12 = pnand %p664_p11, %p796_p5  ;;  %p672_p2 = por %p671_p1, %p670_p0 }
  0x1d   : > { %595 = vmatmul.mubr.msk.bf16.vlgmr.msra.gmra.mxu1 %vm241_vm1, %v222_v14 }
  0x1e   : > { %587 = vmatmul.mubr.msk.bf16.vlgmr.msra.gmra.mxu0 %vm241_vm1, %v222_v14  ;;  %608 = vmatprep.mubr.msk.bf16.mxu1 %vm726_vm0, %v725_v3  ;;  %p666_p13 = pneg %p665_p12 }
  0x1f   : > { %602 = vmatprep.mubr.msk.bf16.mxu0 %vm726_vm0, %v725_v3  ;;  %599 = vmatpush3.bf16.msra.mxu0 %v240_v18 }
  0x20   : > { %600 = vmatprep.subr.bf16.mxu0 %v725_v3  ;;  %p673_p3 = pnand %p672_p2, %p666_p13 }
  0x23   : > { %601 = vmatpush3.bf16.msra.mxu0 %v239_v20 }
  0x24   : > { %612 = vmatprep.subr.bf16.mxu0 %v725_v3 }
  0x26   : > { %603 = vmatmul.mubr.msk.bf16.vlgmr.msra.gmra.mxu0 %vm241_vm1, %v222_v14 }
  0x27   : > { %614 = vmatprep.mubr.msk.bf16.mxu0 %vm726_vm0, %v725_v3 }
  0xdd   : > { %v321_v21 = vpop.f32.mrf.mxu1 }
  0xde   : > { %v327_v22 = vpack.c.bf16 %v321_v21, %v321_v21  ;;  %v279_v23 = vpop.f32.mrf.mxu0 }
  0xdf   : > { %v596_v24 = vpop.f32.mrf.mxu1  ;;  %v285_v26 = vmul.f32 0.25, %v279_v23 }
  0xe0   : > { %v375_v25 = vsel %vm370_vm2, %v327_v22, 0  ;;  %v588_v27 = vpop.f32.mrf.mxu0 }
  0xe1   : > { %v324_v28 = vpop.f32.mrf.mxu1  ;;  %607 = vmatpush3.bf16.xpose.msra.mxu1 %v375_v25  ;;  %v286_v31 = vpack.c.bf16 %v285_v26, %v285_v26 }
  0xe2   : > { %v282_v29 = vpop.f32.mrf.mxu0 }
  0xe3   : > { %v597_v30 = vpop.f32.mrf.mxu1 }
  0xe4   : > { %v589_v32 = vpop.f32.mrf.mxu0 }
  0xe6   : > { %v362_v40 = vpop.f32.mrf.mxu0 }
  0xe7   : > { %v368_v41 = vpack.c.bf16 %v362_v40, %v362_v40 }
  0xe8   : > { %609 = vmatmul.mubr.msk.bf16.vlgmr.msra.gmra.mxu1 %vm370_vm2, %v286_v31  ;;  %v604_v42 = vpop.f32.mrf.mxu0 }
  0xe9   : > { %v437_v43 = vsel %vm435_vm4, %v368_v41, 0 }
  0xea   : > { %v365_v44 = vpop.f32.mrf.mxu0  ;;  %613 = vmatpush3.bf16.msra.mxu0 %v437_v43 }
  0xec   : > { %v605_v45 = vpop.f32.mrf.mxu0 }
 0x1a8   : > { %v411_v34 = vpop.f32.mrf.mxu1 }
 0x1a9   : > { %v412_v35 = vadd.f32 %v411_v34, %v369_v33 }
 0x1aa   : > { %v610_v36 = vpop.f32.mrf.mxu1 }
 0x1ab   : > { %v418_v37 = vsel %vm417_vm3, %v412_v35, -inf }
 0x1ac   : > { %419 = vmax.xlane.f32.xlu0 %v418_v37  ;;  %v414_v38 = vpop.f32.mrf.mxu1 }
 0x1ae   : > { %v611_v39 = vpop.f32.mrf.mxu1 }
 0x235   : > { %v420_v46 = vpop.xlane.xlu0 %419 }
 0x236   : > { %v421_v47 = vsub.f32 %v412_v35, %v420_v46 }
 0x238   : > { %v422_v48 = vmul.f32 1.442695, %v421_v47 }
 0x23a   : > { %659 = vpow2.f32 %v422_v48 }
 0x247   : > { %v660_v49 = vpop.eup %659 }
 0x248   : > { %v424_v50 = vsel %vm417_vm3, %v660_v49, 0.0  ;;  %v431_v51 = vpack.c.bf16 %v660_v49, %v660_v49 }
 0x249   : > { %425 = vadd.xlane.f32.xlu0 %v424_v50 }
 0x24a   : > { %615 = vmatmul.mubr.msk.bf16.vlgmr.msra.gmra.mxu0 %vm417_vm3, %v431_v51 }
 0x2d2   : > { %v426_v52 = vpop.xlane.xlu0 %425 }
 0x2d3   : > { %661 = vrcp.f32 %v426_v52 }
 0x2e0   : > { %v662_v53 = vpop.eup %661 }
 0x2e1   : > { %v428_v54 = vmul.f32 %v662_v53, %v426_v52 }
 0x2e3   : > { %v429_v55 = vsub.f32 2.0, %v428_v54 }
 0x2e5   : > { %v430_v56 = vmul.f32 %v662_v53, %v429_v55 }
 0x30a   : > { %v473_v57 = vpop.f32.mrf.mxu0 }
 0x30b   : > { %v479_v58 = vmul.f32 %v473_v57, %v430_v56 }
 0x30c   : > { %v616_v59 = vpop.f32.mrf.mxu0 }
 0x30d   : > { %480 = vst.msk [vmem:[%s215_s7] sm:$0xff] %vm370_vm2, %v479_v58 }
 0x30e   : > { %v476_v60 = vpop.f32.mrf.mxu0 }
 0x30f   : > { %676 = shalt.err (!%p673_p3)
}
 0x310   : > { %s677_s16 = scalar_lea.hbm %s870_s11, 128  ;;  %s681_s25 = scalar_lea.hbm %s917_s5, 256 }
 0x311   : > { %p678_p4 = scmp.ne.s32.totalorder %s870_s11, %s677_s16  ;;  %p682_p9 = scmp.lt.s32.totalorder %s870_s11, %s917_s5 }
 0x312   : > { %p683_p10 = scmp.lt.s32.totalorder %s681_s25, %s677_s16 }
 0x313   : > { %p679_p7 = pnand %p678_p4, %p796_p5 }
 0x314   : > { %p684_p11 = por %p683_p10, %p682_p9 }
 0x315   : > { %p680_p8 = pneg %p679_p7 }
 0x317   : > { %p685_p12 = pnand %p684_p11, %p680_p8 }
 0x319   : > { %688 = shalt.err (!%p685_p12)
}
 0x31a   : > { %618 = dma.vmem_to_hbm [thread:$0]  (%p796_p5), %s872_s8, 128, %s870_s11, %s482_s22   ;;  %v617_v61 = vpop.f32.mrf.mxu0 }
 0x31b PF: > { %p624_p13 = scmp.ge.s32.totalorder %s723_s21, 2  ;;  %s507_s6 = sand.u32 1, %s711_s18  }
 0x31c   : > { %s508_s7 = scalar_lea.sflag [#allocation3], %s507_s6 }
 0x31d   : > { %p621_p0 = pnand %p624_p13, %p800_p6 }
 0x31f   : > { %p622_p1 = pneg %p621_p0 }
 0x321   : > { %706 = dma.done.wait (%p622_p1), %s508_s7, 128  }
 0x322   : > { %708 = vsyncadd (%p622_p1), %s508_s7, 4294967168  ;;  %p15_p2 = scmp.ge.s32.totalorder %s783_s24, 4   ;;  %s920_s18 = smov %s715_s19 }
 0x323   : > { %s921_s19 = smov %s719_s20  ;;  %s922_s20 = smov %s794_s27 }
 0x324   : > { %s923_s21 = smov %s783_s24  ;;  %17 = sbr.rel (!%p15_p2) target bundleno = 3 (0x3), region = 75 }
 0x329   :  { %513 = vsyncpa [#allocation3], 1 }
 0x32a   :  { %515 = vsyncpa [#allocation3 + $0x1], 1 }

</bundles_post_ra>
